<compile_context>
chip_gen: v5e
topology: v5e:2x2
jax: 0.10.0
libtpu: 0.0.40
codegen_flags: <defaults>
</compile_context>

<pallas_src>
import functools

import jax
import jax.numpy as jnp
from jax.experimental import pallas as pl
from jax.experimental.pallas import tpu as pltpu


def _round_up(x, m):
    return (x + m - 1) // m * m


def _cdiv(a, b):
    return (a + b - 1) // b


@functools.lru_cache(maxsize=1)
def _vmem_budget_bytes():
    """~80% of this generation's per-core VMEM (128 MiB v5e/v6e, 64 MiB v7x)."""
    try:
        cap = int(pltpu.get_tpu_info().vmem_capacity_bytes)
    except Exception:
        cap = 64 * 1024 * 1024  # conservative fallback = v7x per-TC VMEM
    return max(int(cap * 0.8), 32 * 1024 * 1024)


def _swish(h):
    # h * sigmoid(h) == 0.5 * h * (1 + tanh(h/2)) -> single EUP transcendental.
    return 0.5 * h * (1.0 + jnp.tanh(0.5 * h))


# ------------------------------ kernels ------------------------------------ #

def _resident_kernel(x_ref, w1_ref, b1_ref, w2_ref, b2_ref, o_ref):
    # x_ref : (tm, dim_p)      activation tile (storage dtype)
    # w1_ref: (dim_p, dim_p)   W1^T  (in, out) layout, compute dtype — VMEM resident
    # b1_ref: (1, dim_p) f32
    # w2_ref: (dim_p, dim_p)   W2^T
    # b2_ref: (1, dim_p) f32
    # o_ref : (tm, dim_p)
    cdt = w1_ref.dtype
    h = jnp.dot(x_ref[...].astype(cdt), w1_ref[...],
                preferred_element_type=jnp.float32) + b1_ref[...]
    h = _swish(h)
    y = jnp.dot(h.astype(cdt), w2_ref[...],
                preferred_element_type=jnp.float32) + b2_ref[...]
    # Residual add reads the x VMEM tile again (keeps live ranges short).
    o_ref[...] = (x_ref[...].astype(jnp.float32) + y).astype(o_ref.dtype)


def _tiled_kernel(x_ref, w1_ref, b1_ref, w2_ref, b2_ref, o_ref, acc_ref):
    # Hidden-dim-tiled fallback: grid = (row tiles, hidden chunks).
    # x_ref : (tm, dim_p)   resident across the hidden axis
    # w1_ref: (dim_p, tk)   column chunk of W1^T
    # b1_ref: (1, tk)
    # w2_ref: (tk, dim_p)   row chunk of W2^T
    # b2_ref: (1, dim_p)
    # acc_ref: (tm, dim_p) f32 accumulator scratch
    cdt = w1_ref.dtype
    k = pl.program_id(1)

    @pl.when(k == 0)
    def _():
        acc_ref[...] = jnp.zeros_like(acc_ref)

    h = jnp.dot(x_ref[...].astype(cdt), w1_ref[...],
                preferred_element_type=jnp.float32) + b1_ref[...]
    h = _swish(h)
    acc_ref[...] += jnp.dot(h.astype(cdt), w2_ref[...],
                            preferred_element_type=jnp.float32)

    @pl.when(k == pl.num_programs(1) - 1)
    def _():
        o_ref[...] = (x_ref[...].astype(jnp.float32)
                      + acc_ref[...] + b2_ref[...]).astype(o_ref.dtype)


# ------------------------------ wrappers ------------------------------------ #

def prepare_residual_block_params(w1, b1, w2, b2, *, compute_dtype=jnp.bfloat16):
    """One-time parameter prep: transpose to (in, out), cast, pad to lane multiple.

    w1, w2: PyTorch nn.Linear weights in (out, in) layout.  b1, b2: (dim,).
    compute_dtype=None keeps the original weight dtype (exact f32 path).
    Call this once at setup; residual_block_apply consumes the result.
    """
    dim = w1.shape[0]
    dim_p = max(_round_up(dim, 128), 128)
    pd = dim_p - dim
    wdt = w1.dtype if compute_dtype is None else compute_dtype
    w1t = jnp.pad(jnp.transpose(w1).astype(wdt), ((0, pd), (0, pd)))
    w2t = jnp.pad(jnp.transpose(w2).astype(wdt), ((0, pd), (0, pd)))
    b1p = jnp.pad(b1.astype(jnp.float32), ((0, pd),)).reshape(1, dim_p)
    b2p = jnp.pad(b2.astype(jnp.float32), ((0, pd),)).reshape(1, dim_p)
    return w1t, b1p, w2t, b2p


@functools.partial(jax.jit, static_argnames=("tm", "tk", "force_tiled"))
def residual_block_apply(x, w1t, b1, w2t, b2, *, tm=None, tk=None, force_tiled=False):
    """ResidualBlock forward: reshape(-1, dim); x + Linear2(Swish(Linear1(x)))."""
    orig_shape = x.shape
    out_dtype = x.dtype
    dim = orig_shape[-1]
    dim_p = w1t.shape[0]

    x2d = x.reshape(-1, dim)
    rows = x2d.shape[0]
    if dim_p != dim:
        # Zero padding is exact: padded h lanes are 0, Swish(0)=0, padded y and
        # residual lanes are 0; we slice them off at the end.
        x2d = jnp.pad(x2d, ((0, 0), (0, dim_p - dim)))

    x_item = jnp.dtype(x2d.dtype).itemsize
    w_item = jnp.dtype(w1t.dtype).itemsize
    out_item = jnp.dtype(out_dtype).itemsize
    sub = {4: 8, 2: 16, 1: 32}.get(x_item, 8)  # sublane multiple of the storage dtype
    budget = _vmem_budget_bytes()

    # --- row tile: large for small dims (amortize per-grid-step overhead) ----
    if tm is None:
        tm = 1024 if dim_p <= 512 else (512 if dim_p <= 1024 else 256)
    tm_eff = max(min(tm, _round_up(rows, sub)), sub)
    # Keep >=2 parallel grid steps when rows allow it (v7x has 2 TCs/chip).
    if rows >= 2 * sub and _cdiv(rows, tm_eff) < 2:
        tm_eff = max(_round_up(_cdiv(rows, 2), sub), sub)

    def _resident_need(tm_):
        return (2 * tm_ * dim_p * (x_item + out_item)   # x / out double buffers
                + 2 * dim_p * dim_p * w_item            # W1^T, W2^T resident
                + 2 * 8 * dim_p * 4                     # biases (tile-padded)
                + 4 * tm_ * dim_p * 4)                  # f32 temporaries headroom

    if not force_tiled:
        while _resident_need(tm_eff) > budget and tm_eff > max(256, sub):
            tm_eff = max(_round_up(tm_eff // 2, sub), sub)
    use_tiled = force_tiled or _resident_need(tm_eff) > budget

    if use_tiled:
        if tk is None or tk > dim_p or dim_p % tk != 0:
            tk = 512 if dim_p % 512 == 0 else (256 if dim_p % 256 == 0 else 128)

        def _tiled_need(tm_, tk_):
            return (2 * tm_ * dim_p * (x_item + out_item)
                    + 2 * (dim_p * tk_ + tk_ * dim_p) * w_item  # W1^T/W2^T chunks (dbl buf)
                    + tm_ * dim_p * 4                           # acc scratch
                    + 2 * 8 * dim_p * 4                         # biases
                    + (2 * tm_ * tk_ + tm_ * dim_p) * 4)        # f32 temps

        while _tiled_need(tm_eff, tk) > budget and tm_eff > max(64, sub):
            tm_eff = max(_round_up(tm_eff // 2, sub), sub)
        need = _tiled_need(tm_eff, tk)
    else:
        need = _resident_need(tm_eff)

    rows_p = _round_up(rows, tm_eff)
    if rows_p != rows:
        x2d = jnp.pad(x2d, ((0, rows_p - rows), (0, 0)))

    vmem_limit = min(budget, max(int(need * 1.25), 4 * 1024 * 1024))

    cost = pl.CostEstimate(
        flops=4 * rows_p * dim_p * dim_p + 10 * rows_p * dim_p,
        transcendentals=rows_p * dim_p,
        bytes_accessed=(rows_p * dim_p * (x_item + out_item)
                        + 2 * dim_p * dim_p * w_item + 2 * dim_p * 4),
    )

    if not use_tiled:
        out2d = pl.pallas_call(
            _resident_kernel,
            out_shape=jax.ShapeDtypeStruct((rows_p, dim_p), out_dtype),
            grid_spec=pltpu.PrefetchScalarGridSpec(
                num_scalar_prefetch=0,
                grid=(rows_p // tm_eff,),
                in_specs=[
                    pl.BlockSpec((tm_eff, dim_p), lambda i: (i, 0)),     # x tile
                    pl.BlockSpec(memory_space=pltpu.MemorySpace.VMEM),   # W1^T resident
                    pl.BlockSpec(memory_space=pltpu.MemorySpace.VMEM),   # b1 resident
                    pl.BlockSpec(memory_space=pltpu.MemorySpace.VMEM),   # W2^T resident
                    pl.BlockSpec(memory_space=pltpu.MemorySpace.VMEM),   # b2 resident
                ],
                out_specs=pl.BlockSpec((tm_eff, dim_p), lambda i: (i, 0)),
            ),
            compiler_params=pltpu.CompilerParams(
                dimension_semantics=("parallel",),
                vmem_limit_bytes=vmem_limit,
            ),
            cost_estimate=cost,
        )(x2d, w1t, b1, w2t, b2)
    else:
        out2d = pl.pallas_call(
            _tiled_kernel,
            out_shape=jax.ShapeDtypeStruct((rows_p, dim_p), out_dtype),
            grid_spec=pltpu.PrefetchScalarGridSpec(
                num_scalar_prefetch=0,
                grid=(rows_p // tm_eff, dim_p // tk),
                in_specs=[
                    pl.BlockSpec((tm_eff, dim_p), lambda i, k: (i, 0)),  # x (resident over k)
                    pl.BlockSpec((dim_p, tk), lambda i, k: (0, k)),      # W1^T column chunk
                    pl.BlockSpec((1, tk), lambda i, k: (0, k)),          # b1 chunk
                    pl.BlockSpec((tk, dim_p), lambda i, k: (k, 0)),      # W2^T row chunk
                    pl.BlockSpec((1, dim_p), lambda i, k: (0, 0)),       # b2
                ],
                out_specs=pl.BlockSpec((tm_eff, dim_p), lambda i, k: (i, 0)),
                scratch_shapes=[pltpu.VMEM((tm_eff, dim_p), jnp.float32)],
            ),
            compiler_params=pltpu.CompilerParams(
                dimension_semantics=("parallel", "arbitrary"),
                vmem_limit_bytes=vmem_limit,
            ),
            cost_estimate=cost,
        )(x2d, w1t, b1, w2t, b2)

    return out2d[:rows, :dim].reshape(orig_shape)


def residual_block(x, w1, b1, w2, b2, *, compute_dtype=jnp.bfloat16,
                   tm=None, tk=None, force_tiled=False):
    """Convenience form: preps parameters every call, then runs the kernel.

    For repeated calls, run prepare_residual_block_params once and call
    residual_block_apply directly (avoids re-padding/casting the weights).
    compute_dtype=jnp.bfloat16 (default) feeds the MXU in bf16 with f32
    accumulation; compute_dtype=None keeps the exact f32 path.
    """
    params = prepare_residual_block_params(w1, b1, w2, b2, compute_dtype=compute_dtype)
    return residual_block_apply(x, *params, tm=tm, tk=tk, force_tiled=force_tiled)


# ------------------------------ test harness -------------------------------- #

def _reference(x, w1, b1, w2, b2):
    shape = x.shape
    x2d = x.reshape(-1, shape[-1]).astype(jnp.float32)
    h = x2d @ w1.T.astype(jnp.float32) + b1.astype(jnp.float32)
    h = h * jax.nn.sigmoid(h)
    y = h @ w2.T.astype(jnp.float32) + b2.astype(jnp.float32)
    return (x2d + y).reshape(shape)


def _make_params(key, dim):
    k1, k2, k3, k4 = jax.random.split(key, 4)
    bound = 1.0 / (dim ** 0.5)
    w1 = jax.random.uniform(k1, (dim, dim), jnp.float32, -bound, bound)
    b1 = jax.random.uniform(k2, (dim,), jnp.float32, -bound, bound)
    w2 = jax.random.uniform(k3, (dim, dim), jnp.float32, -bound, bound)
    b2 = jax.random.uniform(k4, (dim,), jnp.float32, -bound, bound)
    return w1, b1, w2, b2


if __name__ == "__main__":
    key = jax.random.PRNGKey(0)
    kx1, kp1, kx2, kp2, kx3, kp3 = jax.random.split(key, 6)

    # Case 1: module-sized demo (dim=32, leading 2x8) — exercises feature-dim /
    # row padding; f32 compute path for a near-exact semantics check.
    dim = 32
    x = jax.random.normal(kx1, (2, 8, dim), dtype=jnp.float32)
    w1, b1, w2, b2 = _make_params(kp1, dim)
    out = residual_block(x, w1, b1, w2, b2, compute_dtype=None)
    jax.block_until_ready(out)
    ref = _reference(x, w1, b1, w2, b2)
    assert out.shape == x.shape
    assert jnp.allclose(out, ref, atol=5e-3, rtol=5e-3), "mismatch (dim=32, f32)"

    # Case 2: lane-dense, multi-grid-step resident path with the default bf16
    # MXU inputs (numerics knob: tolerance reflects bf16 matmul inputs).
    dim = 128
    x = jax.random.normal(kx2, (4, 128, dim), dtype=jnp.float32)
    w1, b1, w2, b2 = _make_params(kp2, dim)
    out = residual_block(x, w1, b1, w2, b2)
    jax.block_until_ready(out)
    ref = _reference(x, w1, b1, w2, b2)
    assert out.shape == x.shape
    assert jnp.allclose(out, ref, atol=2e-2, rtol=2e-2), "mismatch (dim=128, bf16)"

    # Case 3: hidden-dim-tiled fallback (the path large dims take on v7x's
    # 64 MiB VMEM), forced on a small shape so it is exercised here.
    dim = 256
    x = jax.random.normal(kx3, (2, 128, dim), dtype=jnp.float32)
    w1, b1, w2, b2 = _make_params(kp3, dim)
    out = residual_block(x, w1, b1, w2, b2, force_tiled=True, tk=128)
    jax.block_until_ready(out)
    ref = _reference(x, w1, b1, w2, b2)
    assert out.shape == x.shape
    assert jnp.allclose(out, ref, atol=2e-2, rtol=2e-2), "mismatch (dim=256, tiled)"

    print("KERNEL_OK")
</pallas_src>

<mosaic_0001>
module attributes {stable_mosaic.version = 11 : i64} {
  func.func @_resident_kernel(%arg0: i32, %arg1: memref<8x128xf32, #tpu.memory_space<vmem>>, %arg2: memref<128x128xf32, #tpu.memory_space<vmem>>, %arg3: memref<1x128xf32, #tpu.memory_space<vmem>>, %arg4: memref<128x128xf32, #tpu.memory_space<vmem>>, %arg5: memref<1x128xf32, #tpu.memory_space<vmem>>, %arg6: memref<8x128xf32, #tpu.memory_space<vmem>>) attributes {dimension_semantics = [#tpu.dimension_semantics<parallel>], iteration_bounds = array<i64: 2>, scalar_prefetch = 0 : i64, scratch_operands = 0 : i64, tpu.core_type = #tpu.core_type<tc>, window_params = [{transform_indices = @transform_0, window_bounds = array<i64: 8, 128>}, {pipeline_mode = #tpu.pipeline_mode<synchronous>, transform_indices = @transform_1, window_bounds = array<i64: 128, 128>}, {pipeline_mode = #tpu.pipeline_mode<synchronous>, transform_indices = @transform_2, window_bounds = array<i64: 1, 128>}, {pipeline_mode = #tpu.pipeline_mode<synchronous>, transform_indices = @transform_3, window_bounds = array<i64: 128, 128>}, {pipeline_mode = #tpu.pipeline_mode<synchronous>, transform_indices = @transform_4, window_bounds = array<i64: 1, 128>}, {transform_indices = @transform_5, window_bounds = array<i64: 8, 128>}]} {
    %c0 = arith.constant 0 : index
    %c0_0 = arith.constant 0 : index
    %0 = vector.load %arg1[%c0, %c0_0] : memref<8x128xf32, #tpu.memory_space<vmem>>, vector<8x128xf32>
    %c0_1 = arith.constant 0 : index
    %c0_2 = arith.constant 0 : index
    %1 = vector.load %arg2[%c0_1, %c0_2] : memref<128x128xf32, #tpu.memory_space<vmem>>, vector<128x128xf32>
    %cst = arith.constant dense<0.000000e+00> : vector<8x128xf32>
    %2 = tpu.matmul %0, %1, %cst {dimension_numbers = #tpu.dot_dimension_numbers<[1], [0], [0], [1], [0, 0, 1, 1], [], []>} : vector<8x128xf32>, vector<128x128xf32>, vector<8x128xf32> -> vector<8x128xf32>
    %c0_3 = arith.constant 0 : index
    %c0_4 = arith.constant 0 : index
    %3 = vector.load %arg3[%c0_3, %c0_4] : memref<1x128xf32, #tpu.memory_space<vmem>>, vector<1x128xf32>
    %4 = vector.broadcast %3 : vector<1x128xf32> to vector<8x128xf32>
    %5 = arith.addf %2, %4 : vector<8x128xf32>
    %cst_5 = arith.constant 5.000000e-01 : f32
    %6 = vector.broadcast %cst_5 : f32 to vector<8x128xf32>
    %7 = arith.mulf %6, %5 : vector<8x128xf32>
    %cst_6 = arith.constant 5.000000e-01 : f32
    %8 = vector.broadcast %cst_6 : f32 to vector<8x128xf32>
    %9 = arith.mulf %8, %5 : vector<8x128xf32>
    %10 = math.tanh %9 : vector<8x128xf32>
    %cst_7 = arith.constant 1.000000e+00 : f32
    %11 = vector.broadcast %cst_7 : f32 to vector<8x128xf32>
    %12 = arith.addf %11, %10 : vector<8x128xf32>
    %13 = arith.mulf %7, %12 : vector<8x128xf32>
    %c0_8 = arith.constant 0 : index
    %c0_9 = arith.constant 0 : index
    %14 = vector.load %arg4[%c0_8, %c0_9] : memref<128x128xf32, #tpu.memory_space<vmem>>, vector<128x128xf32>
    %cst_10 = arith.constant dense<0.000000e+00> : vector<8x128xf32>
    %15 = tpu.matmul %13, %14, %cst_10 {dimension_numbers = #tpu.dot_dimension_numbers<[1], [0], [0], [1], [0, 0, 1, 1], [], []>} : vector<8x128xf32>, vector<128x128xf32>, vector<8x128xf32> -> vector<8x128xf32>
    %c0_11 = arith.constant 0 : index
    %c0_12 = arith.constant 0 : index
    %16 = vector.load %arg5[%c0_11, %c0_12] : memref<1x128xf32, #tpu.memory_space<vmem>>, vector<1x128xf32>
    %17 = vector.broadcast %16 : vector<1x128xf32> to vector<8x128xf32>
    %18 = arith.addf %15, %17 : vector<8x128xf32>
    %c0_13 = arith.constant 0 : index
    %c0_14 = arith.constant 0 : index
    %19 = vector.load %arg1[%c0_13, %c0_14] : memref<8x128xf32, #tpu.memory_space<vmem>>, vector<8x128xf32>
    %20 = arith.addf %19, %18 : vector<8x128xf32>
    %c0_15 = arith.constant 0 : index
    %c0_16 = arith.constant 0 : index
    %21 = vector.load %arg6[%c0_15, %c0_16] : memref<8x128xf32, #tpu.memory_space<vmem>>, vector<8x128xf32>
    tpu.vector_store %arg6[%c0_15, %c0_16], %20 {strides = array<i32>} : memref<8x128xf32, #tpu.memory_space<vmem>>, vector<8x128xf32>,
    return
  }
  func.func @transform_0(%arg0: i32) -> (i32, i32) {
    %c0_i32 = arith.constant 0 : i32
    %c0_i32_0 = arith.constant 0 : i32
    return %arg0, %c0_i32 : i32, i32
  }
  func.func @transform_1(%arg0: i32) -> (i32, i32) {
    %c0_i32 = arith.constant 0 : i32
    %c0_i32_0 = arith.constant 0 : i32
    %c0_i32_1 = arith.constant 0 : i32
    return %c0_i32, %c0_i32_0 : i32, i32
  }
  func.func @transform_2(%arg0: i32) -> (i32, i32) {
    %c0_i32 = arith.constant 0 : i32
    %c0_i32_0 = arith.constant 0 : i32
    %c0_i32_1 = arith.constant 0 : i32
    return %c0_i32, %c0_i32_0 : i32, i32
  }
  func.func @transform_3(%arg0: i32) -> (i32, i32) {
    %c0_i32 = arith.constant 0 : i32
    %c0_i32_0 = arith.constant 0 : i32
    %c0_i32_1 = arith.constant 0 : i32
    return %c0_i32, %c0_i32_0 : i32, i32
  }
  func.func @transform_4(%arg0: i32) -> (i32, i32) {
    %c0_i32 = arith.constant 0 : i32
    %c0_i32_0 = arith.constant 0 : i32
    %c0_i32_1 = arith.constant 0 : i32
    return %c0_i32, %c0_i32_0 : i32, i32
  }
  func.func @transform_5(%arg0: i32) -> (i32, i32) {
    %c0_i32 = arith.constant 0 : i32
    %c0_i32_0 = arith.constant 0 : i32
    return %arg0, %c0_i32 : i32, i32
  }
}

</mosaic_0001>

<bundles_post_ra>
// kernel: residual_block_apply.1
= control target key start
LH: loop header
LB: loop body
LE: loop exit
PB: predicated region body
PF: predicated region fallthrough
CT: control target
= control target key end

     0   :  { %10 = vsyncpa [#allocation3], 0  ;;  %s633_s0 = inlined_call_operand.vmem [shape: f32[16,128], index: 0, kind: input, shape index: {}]   ;;  %s634_s1 = inlined_call_operand.hbm [shape: f32[128,128], index: 1, kind: input, shape index: {}]   ;;  %s635_s2 = inlined_call_operand.vmem [shape: f32[1,128], index: 2, kind: input, shape index: {}]   ;;  %s636_s3 = inlined_call_operand.hbm [shape: f32[128,128], index: 3, kind: input, shape index: {}]   ;;  %s637_s4 = inlined_call_operand.vmem [shape: f32[1,128], index: 4, kind: input, shape index: {}]   ;;  %s638_s5 = inlined_call_operand.vmem [shape: f32[16,128], index: 5, kind: output, shape index: {}]  }
   0x1   :  { %11 = vsyncpa [#allocation5], 0  ;;  %s574_s18 = smov 0  }
   0x2 LB: > { %s169_s21 = sshll.u32 %s634_s1, 4  ;;  %s583_s22 = sadd.s32 4294967295, %s538_s18   ;;  %s538_s18 = sphi %s574_s18, %s17_s18   ;;  %s170_s21 = int_to_ptr.hbm [resolvable:$true] %s169_s21 }
   0x3   : > { %p418_p0 = scmp.ge.s32.totalorder %s538_s18, 1  ;;  %p158_p1 = scmp.lt.s32.totalorder %s538_s18, 3 }
   0x4   : > { %p444_p2 = scmp.eq.s32.totalorder %s583_s22, 0  ;;  %s540_s24 = smov [#allocation2]  }
   0x5   : > { %p588_p3 = pnand %p418_p0, %p158_p1  ;;  %s171_s25 = sshll.u32 %s540_s24, 4  ;;  %s172_s25 = int_to_ptr.vmem [resolvable:$true] %s171_s25 }
   0x6   : > { %s186_s28 = sshll.u32 %s636_s3, 4  ;;  %s541_s29 = smov [#allocation4]   ;;  %s187_s28 = int_to_ptr.hbm [resolvable:$true] %s186_s28 }
   0x7   : > { %p437_p4 = pneg %p588_p3  ;;  %s188_s30 = sshll.u32 %s541_s29, 4  ;;  %s189_s30 = int_to_ptr.vmem [resolvable:$true] %s188_s30 }
   0x8   : > { %s542_s6 = smov 128   ;;  %s543_s7 = smov 8  }
   0x9   : > { %p438_p5 = pnand %p444_p2, %p437_p4  ;;  %214 = sbr.rel (%p588_p3) target bundleno = 321 (0x141), region = 40 }
   0xb   : > { %440 = dma.hbm_to_vmem [thread:$0]  (!%p438_p5), %s170_s21, 2048, %s172_s25, [#allocation3], %s542_s6, %s542_s6, %s543_s7  }
   0xc   : > { %443 = dma.hbm_to_vmem [thread:$0]  (!%p438_p5), %s187_s28, 2048, %s189_s30, [#allocation5], %s542_s6, %s542_s6, %s543_s7  }
   0xe   : > { %529 = dma.done.wait (%p444_p2), [#allocation3], 2048  }
   0xf   : > { %531 = vsyncadd (%p444_p2), [#allocation3], 4294965248 }
  0x10   : > { %533 = dma.done.wait (%p444_p2), [#allocation5], 2048  }
  0x11   : > { %535 = vsyncadd (%p444_p2), [#allocation5], 4294965248  ;;  %v270_v0 = vld [vmem:[#allocation2 + $0x78] sm:$0xff]  ;;  %v269_v1 = vld [vmem:[#allocation2 + $0x70] sm:$0xff]  ;;  %p246_p6 = scmp.lt.s32.totalorder %s583_s22, 1 }
  0x12   : > { %275 = vmatpush.msra.mxu0 %v270_v0  ;;  %v268_v2 = vld [vmem:[#allocation2 + $0x68] sm:$0xff]  ;;  %v267_v3 = vld [vmem:[#allocation2 + $0x60] sm:$0xff]  ;;  %v314_v4 = vld [vmem:[#allocation4 + $0x78] sm:$0xff] }
  0x13   : > { %v266_v5 = vld [vmem:[#allocation2 + $0x58] sm:$0xff]  ;;  %319 = vmatpush.msra.mxu1 %v314_v4  ;;  %v313_v6 = vld [vmem:[#allocation4 + $0x70] sm:$0xff]  ;;  %v312_v7 = vld [vmem:[#allocation4 + $0x68] sm:$0xff]  ;;  %s641_s22 = smov (!%p246_p6, %s583_s22), 1 }
  0x14   : > { %276 = vmatpush.msra.mxu0 %v269_v1  ;;  %v265_v8 = vld [vmem:[#allocation2 + $0x50] sm:$0xff]  ;;  %v311_v9 = vld [vmem:[#allocation4 + $0x60] sm:$0xff]  ;;  %v264_v10 = vld [vmem:[#allocation2 + $0x48] sm:$0xff]  ;;  %s425_s8 = sshll.u32 %s641_s22, 3 }
  0x15   : > { %320 = vmatpush.msra.mxu1 %v313_v6  ;;  %v310_v11 = vld [vmem:[#allocation4 + $0x58] sm:$0xff]  ;;  %v263_v12 = vld [vmem:[#allocation2 + $0x40] sm:$0xff]  ;;  %v309_v13 = vld [vmem:[#allocation4 + $0x50] sm:$0xff]  ;;  %s249_s11 = scalar_lea.vmem %s633_s0, %s425_s8  ;;  %s253_s19 = scalar_lea.vmem %s638_s5, %s425_s8 }
  0x16   : > { %277 = vmatpush.msra.mxu0 %v268_v2  ;;  %v262_v14 = vld [vmem:[#allocation2 + $0x38] sm:$0xff]  ;;  %v308_v15 = vld [vmem:[#allocation4 + $0x48] sm:$0xff]  ;;  %v261_v16 = vld [vmem:[#allocation2 + $0x30] sm:$0xff] }
  0x17   : > { %321 = vmatpush.msra.mxu1 %v312_v7  ;;  %v307_v17 = vld [vmem:[#allocation4 + $0x40] sm:$0xff]  ;;  %v260_v18 = vld [vmem:[#allocation2 + $0x28] sm:$0xff]  ;;  %v258_v20 = vld [vmem:[#allocation2 + $0x18] sm:$0xff] }
  0x18   : > { %278 = vmatpush.msra.mxu0 %v267_v3  ;;  %v259_v19 = vld [vmem:[#allocation2 + $0x20] sm:$0xff]  ;;  %v257_v21 = vld [vmem:[#allocation2 + $0x10] sm:$0xff]  ;;  %v256_v22 = vld [vmem:[#allocation2 + $0x8] sm:$0xff] }
  0x19   : > { %322 = vmatpush.msra.mxu1 %v311_v9  ;;  %v255_v23 = vld [vmem:[#allocation2] sm:$0xff]  ;;  %v306_v25 = vld [vmem:[#allocation4 + $0x38] sm:$0xff]  ;;  %v305_v26 = vld [vmem:[#allocation4 + $0x30] sm:$0xff] }
  0x1a   : > { %279 = vmatpush.msra.mxu0 %v266_v5  ;;  %v254_v24 = vld [vmem:[%s249_s11] sm:$0xff]  ;;  %v304_v27 = vld [vmem:[#allocation4 + $0x28] sm:$0xff]  ;;  %v302_v29 = vld [vmem:[#allocation4 + $0x18] sm:$0xff] }
  0x1b   : > { %323 = vmatpush.msra.mxu1 %v310_v11  ;;  %v303_v28 = vld [vmem:[#allocation4 + $0x20] sm:$0xff]  ;;  %v301_v30 = vld [vmem:[#allocation4 + $0x10] sm:$0xff]  ;;  %v300_v31 = vld [vmem:[#allocation4 + $0x8] sm:$0xff] }
  0x1c   : > { %280 = vmatpush.msra.mxu0 %v265_v8  ;;  %v299_v32 = vld [vmem:[#allocation4] sm:$0xff] }
  0x1d   : > { %324 = vmatpush.msra.mxu1 %v309_v13  ;;  %v460_v33 = vld [vmem:[%s635_s2] ss:$0 sm:$0xff] }
  0x1e   : > { %281 = vmatpush.msra.mxu0 %v264_v10  ;;  %v461_v40 = vld [vmem:[%s637_s4] ss:$0 sm:$0xff] }
  0x1f   : > { %325 = vmatpush.msra.mxu1 %v308_v15 }
  0x20   : > { %282 = vmatpush.msra.mxu0 %v263_v12 }
  0x21   : > { %326 = vmatpush.msra.mxu1 %v307_v17 }
  0x22   : > { %283 = vmatpush.msra.mxu0 %v262_v14 }
  0x23   : > { %327 = vmatpush.msra.mxu1 %v306_v25 }
  0x24   : > { %284 = vmatpush.msra.mxu0 %v261_v16 }
  0x25   : > { %328 = vmatpush.msra.mxu1 %v305_v26 }
  0x26   : > { %285 = vmatpush.msra.mxu0 %v260_v18 }
  0x27   : > { %329 = vmatpush.msra.mxu1 %v304_v27 }
  0x28   : > { %286 = vmatpush.msra.mxu0 %v259_v19 }
  0x29   : > { %330 = vmatpush.msra.mxu1 %v303_v28 }
  0x2a   : > { %287 = vmatpush.msra.mxu0 %v258_v20 }
  0x2b   : > { %331 = vmatpush.msra.mxu1 %v302_v29 }
  0x2c   : > { %288 = vmatpush.msra.mxu0 %v257_v21 }
  0x2d   : > { %332 = vmatpush.msra.mxu1 %v301_v30 }
  0x2e   : > { %289 = vmatpush.msra.mxu0 %v256_v22 }
  0x2f   : > { %333 = vmatpush.msra.mxu1 %v300_v31 }
  0x30   : > { %290 = vmatpush.msra.mxu0 %v255_v23 }
  0x31   : > { %291 = vmatmul.f32.vlgmr.msra.gmra.mxu0 %v254_v24  ;;  %334 = vmatpush.msra.mxu1 %v299_v32 }
  0xae   : > { %v292_v34 = vpop.f32.mrf.mxu0 }
  0xaf   : > { %v293_v35 = vadd.f32 %v460_v33, %v292_v34 }
  0xb1   : > { %v295_v36 = vmul.f32 0.5, %v293_v35 }
  0xb3   : > { %462 = vtanh.f32 %v295_v36 }
  0xb9   : > { %v463_v37 = vpop.eup %462 }
  0xba   : > { %v297_v38 = vadd.f32 1.0, %v463_v37 }
  0xbc   : > { %v298_v39 = vmul.f32 %v297_v38, %v295_v36 }
  0xbe   : > { %335 = vmatmul.f32.vlgmr.msra.gmra.mxu1 %v298_v39 }
 0x13b   : > { %v336_v41 = vpop.f32.mrf.mxu1 }
 0x13c   : > { %v337_v42 = vadd.f32 %v461_v40, %v336_v41 }
 0x13e   : > { %v339_v43 = vadd.f32 %v337_v42, %v254_v24 }
 0x140   : > { %340 = vst [vmem:[%s253_s19] sm:$0xff] %v339_v43 }
 0x141 PF: > { %s17_s18 = sadd.s32 1, %s538_s18  }
 0x142   : > { %p14_p7 = scmp.ge.s32.totalorder %s17_s18, 4  }
 0x144   :  { %16 = sbr.rel (!%p14_p7) target bundleno = 2 (0x2), region = 79 }
 0x149   :  { %360 = vsyncpa [#allocation3], 1 }
 0x14a   :  { %362 = vsyncpa [#allocation3 + $0x1], 1 }
 0x14b   :  { %363 = vsyncpa [#allocation5], 1 }

</bundles_post_ra>
